<compile_context>
chip_gen: v6e
topology: v6e:2x2x1
jax: 0.10.0
libtpu: 0.0.40
codegen_flags: <defaults>
</compile_context>

<pallas_src>
import math
import jax
import jax.numpy as jnp
from jax import lax
from jax.experimental import pallas as pl
from jax.experimental.pallas import tpu as pltpu

LN_EPS = 1e-5
_SQRT_2_OVER_PI = 0.7978845608028654


def projection_head_kernel(x_ref, w1_ref, b1_ref, w2_ref, b2_ref,
                           gamma_ref, beta_ref, o_ref):
    # Cast x to bf16 in-kernel (rides idle VPU slots; kernel is HBM-bound).
    x_bf = x_ref[...].astype(jnp.bfloat16)

    # projected = Linear(embedding_dim -> projection_dim)
    # bf16 x bf16 -> f32 accumulate on the MXU.
    projected = jnp.dot(x_bf, w1_ref[...], preferred_element_type=jnp.float32)
    projected = projected + b1_ref[...]          # b1 is (1, P), broadcasts over rows

    # GELU, tanh approximation (routes the transcendental to the EUP).
    c = jnp.float32(_SQRT_2_OVER_PI)
    p3 = projected * projected * projected
    h = 0.5 * projected * (1.0 + jnp.tanh(c * (projected + 0.044715 * p3)))

    # fc = Linear(projection_dim -> projection_dim), bf16 MXU / f32 accumulate.
    y = jnp.dot(h.astype(jnp.bfloat16), w2_ref[...],
                preferred_element_type=jnp.float32)
    y = y + b2_ref[...]

    # dropout (eval) = identity; residual add with pre-GELU projection.
    y = y + projected

    # LayerNorm over the last (projection) dim — single reduction pass.
    # Clamp var at 0: with residual + biases the row mean can be O(1-10) while
    # std is O(1), so E[y^2]-E[y]^2 can go slightly negative from cancellation.
    inv_p = jnp.float32(1.0 / y.shape[-1])
    s = jnp.sum(y, axis=-1, keepdims=True)
    ss = jnp.sum(y * y, axis=-1, keepdims=True)
    mean = s * inv_p
    var = jnp.maximum(ss * inv_p - mean * mean, 0.0)
    y_norm = (y - mean) * lax.rsqrt(var + jnp.float32(LN_EPS))
    out = y_norm * gamma_ref[...] + beta_ref[...]

    o_ref[...] = out.astype(o_ref.dtype)


def prepare_params(w1, b1, w2, b2, gamma, beta):
    """One-time parameter prep (do this at load time, NOT per forward call).

    Weights go to bf16 for the MXU; biases / LN params become (1, P) f32 so
    they sit lane-dense in VMEM and broadcast over rows in the kernel.
    """
    P = w1.shape[1]
    return (
        w1.astype(jnp.bfloat16),
        b1.reshape(1, P).astype(jnp.float32),
        w2.astype(jnp.bfloat16),
        b2.reshape(1, P).astype(jnp.float32),
        gamma.reshape(1, P).astype(jnp.float32),
        beta.reshape(1, P).astype(jnp.float32),
    )


def _pick_block_b(B):
    """Target 512-1024 rows/tile (mem-bound sweet spot), but keep >= 4 grid
    steps when the batch allows it (2 steps per TensorCore on v7x) and never
    go below 128 rows."""
    bb = 1024
    while bb > 128 and pl.cdiv(B, bb) < 4:
        bb //= 2
    return bb


def projection_head(x, params, *, block_b=None, out_dtype=jnp.float32):
    """x: [B, E] float32, params = prepare_params(...). Returns [B, P].

    out_dtype=jnp.bfloat16 halves output writeback bytes (the dominant HBM
    traffic per row) when the consumer tolerates bf16.
    """
    w1_bf, b1_2d, w2_bf, b2_2d, gamma_2d, beta_2d = params
    B, E = x.shape
    P = w1_bf.shape[1]

    if block_b is None:
        block_b = _pick_block_b(B)
    nb = pl.cdiv(B, block_b)   # Pallas masks the ragged last tile (no pad/slice).

    # Constant index_map => loaded once, stays VMEM-resident across grid steps.
    def resident(shape):
        return pl.BlockSpec(shape, lambda i: (0,) * len(shape))

    out_bytes = jnp.dtype(out_dtype).itemsize
    flops = 2 * B * (E * P + P * P)
    transcendentals = B * P  # one tanh per projected element
    bytes_accessed = (
        x.size * 4 + w1_bf.size * 2 + w2_bf.size * 2
        + 4 * (b1_2d.size + b2_2d.size + gamma_2d.size + beta_2d.size)
        + B * P * out_bytes
    )

    return pl.pallas_call(
        projection_head_kernel,
        out_shape=jax.ShapeDtypeStruct((B, P), out_dtype),
        grid=(nb,),
        in_specs=[
            pl.BlockSpec((block_b, E), lambda i: (i, 0)),   # x tile, pipelined
            resident((E, P)),                               # w1 (bf16)
            resident((1, P)),                               # b1
            resident((P, P)),                               # w2 (bf16)
            resident((1, P)),                               # b2
            resident((1, P)),                               # gamma
            resident((1, P)),                               # beta
        ],
        out_specs=pl.BlockSpec((block_b, P), lambda i: (i, 0)),
        compiler_params=pltpu.CompilerParams(
            # Batch steps are independent -> megacore-shardable on v7x (2 TCs).
            dimension_semantics=("parallel",),
            # Explicit scoped limit: needed on v5e (16 MiB default) once tiles
            # grow; fits all of v5e/v6e/v7x (64 MiB physical on v7x).  At
            # block_b=1024 the double-buffered x+out tiles + resident weights
            # are ~1.2 MiB, so VMEM is not the limiter here.
            vmem_limit_bytes=32 * 1024 * 1024,
        ),
        cost_estimate=pl.CostEstimate(
            flops=flops,
            transcendentals=transcendentals,
            bytes_accessed=bytes_accessed,
        ),
    )(x, w1_bf, b1_2d, w2_bf, b2_2d, gamma_2d, beta_2d)


def reference(x, w1, b1, w2, b2, gamma, beta):
    # Exact module semantics (f32 matmuls, erf GELU) — kernel is compared with
    # a relaxed tolerance to cover bf16-MXU rounding + tanh-GELU approximation.
    projected = x @ w1 + b1
    h = jax.nn.gelu(projected, approximate=False)
    y = h @ w2 + b2
    y = y + projected
    mean = jnp.mean(y, axis=-1, keepdims=True)
    var = jnp.mean(jnp.square(y - mean), axis=-1, keepdims=True)
    return (y - mean) / jnp.sqrt(var + LN_EPS) * gamma + beta


if __name__ == "__main__":
    # batch, embedding_dim, projection_dim — small but enough rows to exercise
    # the batch grid (block_b auto-selects 128 here -> 2 grid steps).
    B, E, P = 256, 32, 128

    key = jax.random.PRNGKey(0)
    kx, kw1, kb1, kw2, kb2 = jax.random.split(key, 5)

    x = jax.random.normal(kx, (B, E), dtype=jnp.float32)
    # Deterministic parameter init (synthetic, not a checkpoint load).
    w1 = jax.random.normal(kw1, (E, P), dtype=jnp.float32) / math.sqrt(E)
    b1 = jax.random.normal(kb1, (P,), dtype=jnp.float32) * 0.01
    w2 = jax.random.normal(kw2, (P, P), dtype=jnp.float32) / math.sqrt(P)
    b2 = jax.random.normal(kb2, (P,), dtype=jnp.float32) * 0.01
    gamma = jnp.ones((P,), dtype=jnp.float32)   # nn.LayerNorm default weight
    beta = jnp.zeros((P,), dtype=jnp.float32)   # nn.LayerNorm default bias

    # Parameter prep hoisted out of the hot path (done once).
    params = prepare_params(w1, b1, w2, b2, gamma, beta)

    out = projection_head(x, params)
    out = jax.block_until_ready(out)

    ref = reference(x, w1, b1, w2, b2, gamma, beta)
    assert out.shape == (B, P)
    # Tolerance relaxed vs. the f32/erf reference: bf16 MXU inputs + tanh GELU
    # introduce ~1e-2 absolute deviations on the O(1) LayerNorm output.
    assert jnp.allclose(out, ref, atol=5e-2, rtol=5e-2), "mismatch vs JAX reference"

    print("KERNEL_OK")
</pallas_src>

<mosaic_0001>
module attributes {stable_mosaic.version = 11 : i64} {
  func.func @projection_head_kernel(%arg0: i32, %arg1: memref<128x32xf32, #tpu.memory_space<vmem>>, %arg2: memref<32x128xbf16, #tpu.memory_space<vmem>>, %arg3: memref<1x128xf32, #tpu.memory_space<vmem>>, %arg4: memref<128x128xbf16, #tpu.memory_space<vmem>>, %arg5: memref<1x128xf32, #tpu.memory_space<vmem>>, %arg6: memref<1x128xf32, #tpu.memory_space<vmem>>, %arg7: memref<1x128xf32, #tpu.memory_space<vmem>>, %arg8: memref<128x128xf32, #tpu.memory_space<vmem>>) attributes {dimension_semantics = [#tpu.dimension_semantics<parallel>], iteration_bounds = array<i64: 2>, scalar_prefetch = 0 : i64, scratch_operands = 0 : i64, tpu.core_type = #tpu.core_type<tc>, window_params = [{transform_indices = @transform_0, window_bounds = array<i64: 128, 32>}, {pipeline_mode = #tpu.pipeline_mode<synchronous>, transform_indices = @transform_1, window_bounds = array<i64: 32, 128>}, {pipeline_mode = #tpu.pipeline_mode<synchronous>, transform_indices = @transform_2, window_bounds = array<i64: 1, 128>}, {pipeline_mode = #tpu.pipeline_mode<synchronous>, transform_indices = @transform_3, window_bounds = array<i64: 128, 128>}, {pipeline_mode = #tpu.pipeline_mode<synchronous>, transform_indices = @transform_4, window_bounds = array<i64: 1, 128>}, {pipeline_mode = #tpu.pipeline_mode<synchronous>, transform_indices = @transform_5, window_bounds = array<i64: 1, 128>}, {pipeline_mode = #tpu.pipeline_mode<synchronous>, transform_indices = @transform_6, window_bounds = array<i64: 1, 128>}, {transform_indices = @transform_7, window_bounds = array<i64: 128, 128>}]} {
    %c0 = arith.constant 0 : index
    %c0_0 = arith.constant 0 : index
    %0 = vector.load %arg1[%c0, %c0_0] : memref<128x32xf32, #tpu.memory_space<vmem>>, vector<128x32xf32>
    %1 = arith.truncf %0 : vector<128x32xf32> to vector<128x32xbf16>
    %c0_1 = arith.constant 0 : index
    %c0_2 = arith.constant 0 : index
    %2 = vector.load %arg2[%c0_1, %c0_2] : memref<32x128xbf16, #tpu.memory_space<vmem>>, vector<32x128xbf16>
    %cst = arith.constant dense<0.000000e+00> : vector<128x128xf32>
    %3 = tpu.matmul %1, %2, %cst {dimension_numbers = #tpu.dot_dimension_numbers<[1], [0], [0], [1], [0, 0, 1, 1], [], []>} : vector<128x32xbf16>, vector<32x128xbf16>, vector<128x128xf32> -> vector<128x128xf32>
    %c0_3 = arith.constant 0 : index
    %c0_4 = arith.constant 0 : index
    %4 = vector.load %arg3[%c0_3, %c0_4] : memref<1x128xf32, #tpu.memory_space<vmem>>, vector<1x128xf32>
    %5 = vector.broadcast %4 : vector<1x128xf32> to vector<128x128xf32>
    %6 = arith.addf %3, %5 : vector<128x128xf32>
    %7 = arith.mulf %6, %6 : vector<128x128xf32>
    %8 = arith.mulf %7, %6 : vector<128x128xf32>
    %cst_5 = arith.constant 5.000000e-01 : f32
    %9 = vector.broadcast %cst_5 : f32 to vector<128x128xf32>
    %10 = arith.mulf %9, %6 : vector<128x128xf32>
    %cst_6 = arith.constant 4.471500e-02 : f32
    %11 = vector.broadcast %cst_6 : f32 to vector<128x128xf32>
    %12 = arith.mulf %11, %8 : vector<128x128xf32>
    %13 = arith.addf %6, %12 : vector<128x128xf32>
    %cst_7 = arith.constant 0.797884583 : f32
    %14 = vector.broadcast %cst_7 : f32 to vector<128x128xf32>
    %15 = arith.mulf %14, %13 : vector<128x128xf32>
    %16 = math.tanh %15 : vector<128x128xf32>
    %cst_8 = arith.constant 1.000000e+00 : f32
    %17 = vector.broadcast %cst_8 : f32 to vector<128x128xf32>
    %18 = arith.addf %17, %16 : vector<128x128xf32>
    %19 = arith.mulf %10, %18 : vector<128x128xf32>
    %20 = arith.truncf %19 : vector<128x128xf32> to vector<128x128xbf16>
    %c0_9 = arith.constant 0 : index
    %c0_10 = arith.constant 0 : index
    %21 = vector.load %arg4[%c0_9, %c0_10] : memref<128x128xbf16, #tpu.memory_space<vmem>>, vector<128x128xbf16>
    %cst_11 = arith.constant dense<0.000000e+00> : vector<128x128xf32>
    %22 = tpu.matmul %20, %21, %cst_11 {dimension_numbers = #tpu.dot_dimension_numbers<[1], [0], [0], [1], [0, 0, 1, 1], [], []>} : vector<128x128xbf16>, vector<128x128xbf16>, vector<128x128xf32> -> vector<128x128xf32>
    %c0_12 = arith.constant 0 : index
    %c0_13 = arith.constant 0 : index
    %23 = vector.load %arg5[%c0_12, %c0_13] : memref<1x128xf32, #tpu.memory_space<vmem>>, vector<1x128xf32>
    %24 = vector.broadcast %23 : vector<1x128xf32> to vector<128x128xf32>
    %25 = arith.addf %22, %24 : vector<128x128xf32>
    %26 = arith.addf %25, %6 : vector<128x128xf32>
    %cst_14 = arith.constant dense<0.000000e+00> : vector<128xf32>
    %27 = vector.multi_reduction <add>, %26, %cst_14 [1] : vector<128x128xf32> to vector<128xf32>
    %28 = vector.shape_cast %27 : vector<128xf32> to vector<128x1xf32>
    %29 = arith.mulf %26, %26 : vector<128x128xf32>
    %cst_15 = arith.constant dense<0.000000e+00> : vector<128xf32>
    %30 = vector.multi_reduction <add>, %29, %cst_15 [1] : vector<128x128xf32> to vector<128xf32>
    %31 = vector.shape_cast %30 : vector<128xf32> to vector<128x1xf32>
    %cst_16 = arith.constant 7.812500e-03 : f32
    %32 = vector.broadcast %cst_16 : f32 to vector<128x1xf32>
    %33 = arith.mulf %28, %32 : vector<128x1xf32>
    %cst_17 = arith.constant 7.812500e-03 : f32
    %34 = vector.broadcast %cst_17 : f32 to vector<128x1xf32>
    %35 = arith.mulf %31, %34 : vector<128x1xf32>
    %36 = arith.mulf %33, %33 : vector<128x1xf32>
    %37 = arith.subf %35, %36 : vector<128x1xf32>
    %cst_18 = arith.constant 0.000000e+00 : f32
    %38 = vector.broadcast %cst_18 : f32 to vector<128x1xf32>
    %39 = arith.maximumf %37, %38 : vector<128x1xf32>
    %40 = vector.broadcast %33 : vector<128x1xf32> to vector<128x128xf32>
    %41 = arith.subf %26, %40 : vector<128x128xf32>
    %cst_19 = arith.constant 9.99999974E-6 : f32
    %42 = vector.broadcast %cst_19 : f32 to vector<128x1xf32>
    %43 = arith.addf %39, %42 : vector<128x1xf32>
    %44 = math.rsqrt %43 : vector<128x1xf32>
    %45 = vector.broadcast %44 : vector<128x1xf32> to vector<128x128xf32>
    %46 = arith.mulf %41, %45 : vector<128x128xf32>
    %c0_20 = arith.constant 0 : index
    %c0_21 = arith.constant 0 : index
    %47 = vector.load %arg6[%c0_20, %c0_21] : memref<1x128xf32, #tpu.memory_space<vmem>>, vector<1x128xf32>
    %48 = vector.broadcast %47 : vector<1x128xf32> to vector<128x128xf32>
    %49 = arith.mulf %46, %48 : vector<128x128xf32>
    %c0_22 = arith.constant 0 : index
    %c0_23 = arith.constant 0 : index
    %50 = vector.load %arg7[%c0_22, %c0_23] : memref<1x128xf32, #tpu.memory_space<vmem>>, vector<1x128xf32>
    %51 = vector.broadcast %50 : vector<1x128xf32> to vector<128x128xf32>
    %52 = arith.addf %49, %51 : vector<128x128xf32>
    %c0_24 = arith.constant 0 : index
    %c0_25 = arith.constant 0 : index
    %53 = vector.load %arg8[%c0_24, %c0_25] : memref<128x128xf32, #tpu.memory_space<vmem>>, vector<128x128xf32>
    tpu.vector_store %arg8[%c0_24, %c0_25], %52 {strides = array<i32>} : memref<128x128xf32, #tpu.memory_space<vmem>>, vector<128x128xf32>,
    return
  }
  func.func @transform_0(%arg0: i32) -> (i32, i32) {
    %c0_i32 = arith.constant 0 : i32
    %c0_i32_0 = arith.constant 0 : i32
    return %arg0, %c0_i32 : i32, i32
  }
  func.func @transform_1(%arg0: i32) -> (i32, i32) {
    %c0_i32 = arith.constant 0 : i32
    %c0_i32_0 = arith.constant 0 : i32
    %c0_i32_1 = arith.constant 0 : i32
    return %c0_i32, %c0_i32_0 : i32, i32
  }
  func.func @transform_2(%arg0: i32) -> (i32, i32) {
    %c0_i32 = arith.constant 0 : i32
    %c0_i32_0 = arith.constant 0 : i32
    %c0_i32_1 = arith.constant 0 : i32
    return %c0_i32, %c0_i32_0 : i32, i32
  }
  func.func @transform_3(%arg0: i32) -> (i32, i32) {
    %c0_i32 = arith.constant 0 : i32
    %c0_i32_0 = arith.constant 0 : i32
    %c0_i32_1 = arith.constant 0 : i32
    return %c0_i32, %c0_i32_0 : i32, i32
  }
  func.func @transform_4(%arg0: i32) -> (i32, i32) {
    %c0_i32 = arith.constant 0 : i32
    %c0_i32_0 = arith.constant 0 : i32
    %c0_i32_1 = arith.constant 0 : i32
    return %c0_i32, %c0_i32_0 : i32, i32
  }
  func.func @transform_5(%arg0: i32) -> (i32, i32) {
    %c0_i32 = arith.constant 0 : i32
    %c0_i32_0 = arith.constant 0 : i32
    %c0_i32_1 = arith.constant 0 : i32
    return %c0_i32, %c0_i32_0 : i32, i32
  }
  func.func @transform_6(%arg0: i32) -> (i32, i32) {
    %c0_i32 = arith.constant 0 : i32
    %c0_i32_0 = arith.constant 0 : i32
    %c0_i32_1 = arith.constant 0 : i32
    return %c0_i32, %c0_i32_0 : i32, i32
  }
  func.func @transform_7(%arg0: i32) -> (i32, i32) {
    %c0_i32 = arith.constant 0 : i32
    %c0_i32_0 = arith.constant 0 : i32
    return %arg0, %c0_i32 : i32, i32
  }
}

</mosaic_0001>

<bundles_post_ra>
// kernel: tpu_custom_call.1
= control target key start
LH: loop header
LB: loop body
LE: loop exit
PB: predicated region body
PF: predicated region fallthrough
CT: control target
= control target key end

     0   :  { %12 = vsyncpa [#allocation3], 0  ;;  %s2060_s0 = inlined_call_operand.vmem [shape: f32[256,32], index: 0, kind: input, shape index: {}]   ;;  %s2061_s1 = inlined_call_operand.vmem [shape: bf16[32,128], index: 1, kind: input, shape index: {}]   ;;  %s2062_s2 = inlined_call_operand.vmem [shape: f32[1,128], index: 2, kind: input, shape index: {}]   ;;  %s2063_s3 = inlined_call_operand.vmem [shape: bf16[128,128], index: 3, kind: input, shape index: {}]   ;;  %s2064_s4 = inlined_call_operand.vmem [shape: f32[1,128], index: 4, kind: input, shape index: {}]   ;;  %s2065_s5 = inlined_call_operand.vmem [shape: f32[1,128], index: 5, kind: input, shape index: {}]   ;;  %s2066_s6 = inlined_call_operand.vmem [shape: f32[1,128], index: 6, kind: input, shape index: {}]   ;;  %s2067_s7 = inlined_call_operand.hbm [shape: f32[256,128], index: 7, kind: output, shape index: {}]  }
   0x1   :  { %14 = vsyncpa [#allocation3 + $0x1], 0  ;;  %s1497_s24 = smov 0   ;;  %s1499_s25 = smov 0  }
   0x2   :  { %s1501_s26 = smov 0   ;;  %s1503_s27 = smov 0  }
   0x3 LB: > { %s1518_s28 = sadd.s32 4294967295, %s1452_s27   ;;  %s1148_s29 = sadd.s32 4294967294, %s1452_s27   ;;  %s1452_s27 = sphi %s1503_s27, %s2073_s27   ;;  %s1448_s26 = sphi %s1501_s26, %s2072_s26   ;;  %s1444_s25 = sphi %s1499_s25, %s2071_s25   ;;  %s1440_s24 = sphi %s1497_s24, %s2070_s24  }
   0x4   : > { %s1522_s30 = sadd.s32 1, %s1452_s27   ;;  %s179_s8 = sadd.s32 1, %s1448_s26 }
   0x5   : > { %s176_s9 = ssub.s32 %s1452_s27, %s1522_s30  ;;  %p189_p0 = scmp.ne.s32.totalorder %s1448_s26, %s1444_s25 }
   0x6   : > { %p177_p1 = scmp.eq.s32.totalorder %s176_s9, 0  ;;  %p190_p2 = scmp.eq.s32.totalorder %s1518_s28, 1 }
   0x7   : > { %p195_p3 = scmp.ne.s32.totalorder %s1444_s25, %s1440_s24  ;;  %p196_p4 = scmp.eq.s32.totalorder %s1148_s29, 1 }
   0x8   : > { %s1533_s10 = scalar_select %p177_p1, %s1448_s26, %s179_s8  }
   0x9   : > { %p1535_p5 = por %p190_p2, %p189_p0  ;;  %p1539_p6 = por %p196_p4, %p195_p3 }
   0xa   : > { %p1151_p7 = scmp.ge.s32.totalorder %s1452_s27, 1  ;;  %p241_p8 = scmp.lt.s32.totalorder %s1452_s27, 3 }
   0xc   : > { %p242_p9 = pnand %p1151_p7, %p241_p8 }
   0xd   : > { %s1153_s15 = sshll.u32 (!%p242_p9), %s1518_s28, 4  ;;  %s270_s14 = sand.u32 (!%p242_p9), 1, %s1444_s25  }
   0xe   : > { %245 = sbr.rel (%p242_p9) target bundleno = 701 (0x2bd), region = 48  ;;  %p274_p10 = scmp.lt.s32.totalorder (!%p242_p9), %s1153_s15, 31 }
   0xf   : > { %s1152_s17 = sshll.u32 (!%p242_p9), %s270_s14, 7  ;;  %s1454_s13 = smov (!%p242_p9), [#allocation2]  }
  0x10   : > { %s1904_s20 = scalar_lea.vmem (!%p242_p9), [#allocation2], %s1152_s17 }
  0x11   : > { %s1086_s22 = sshll.u32 (!%p242_p9), %s1904_s20, 4  ;;  %s2013_s22 = int_to_ptr.vmem [resolvable:$true] %s1086_s22 }
  0x12   : > { %s1392_s9 = scalar_lea.vmem (!%p242_p9), %s2013_s22, 2048 }
  0x13   : > { %v1318_v0 = vld [vmem:[%s2061_s1 + $0x8] sm:$0xff]   ;;  %v1319_v1 = vld [vmem:[%s2061_s1] sm:$0xff]   ;;  %s2075_s15 = smov (!%p274_p10, %s1153_s15), 31  ;;  %vm328_vm0 = vcmask 261120   ;;  %v1320_v26 = vld [vmem:[%s2063_s3 + $0x38] sm:$0xff]   ;;  %p1393_p11 = scmp.ne.s32.totalorder %s2013_s22, %s1392_s9 }
  0x14   : > { %1209 = vmatprep.subr.bf16.mxu0 %v1318_v0  ;;  %s1154_s18 = sshll.u32 %s2075_s15, 3  ;;  %1261 = vmatprep.subr.bf16.mxu1 %v1320_v26  ;;  %v1321_v27 = vld [vmem:[%s2063_s3 + $0x30] sm:$0xff]   ;;  %v1322_v28 = vld [vmem:[%s2063_s3 + $0x28] sm:$0xff]   ;;  %v1323_v29 = vld [vmem:[%s2063_s3 + $0x20] sm:$0xff]   ;;  %s1396_s15 = sshll.u32 %s1454_s13, 4  ;;  %s1397_s15 = int_to_ptr.vmem [resolvable:$false] %s1396_s15 }
  0x15   : > { %1210 = vmatpush3.bf16.msra.mxu0 %v1318_v0  ;;  %s1555_s21 = scalar_lea.vmem %s2060_s0, %s1154_s18  ;;  %1269 = vmatpush3.bf16.msra.mxu1 %v1320_v26  ;;  %v1324_v30 = vld [vmem:[%s2063_s3 + $0x18] sm:$0xff]   ;;  %v1325_v31 = vld [vmem:[%s2063_s3 + $0x10] sm:$0xff]   ;;  %v1326_v32 = vld [vmem:[%s2063_s3 + $0x8] sm:$0xff]   ;;  %p1394_p12 = pnand %p1393_p11, %p1535_p5 }
  0x16   : > { %1211 = vmatprep.subr.bf16.mxu0 %v1319_v1  ;;  %v281_v2 = vld [vmem:[%s1555_s21] sm:$0xff]  ;;  %v282_v3 = vld [vmem:[%s1555_s21 + $0x8] sm:$0xff]  ;;  %v283_v4 = vld [vmem:[%s1555_s21 + $0x10] sm:$0xff]  ;;  %1262 = vmatprep.subr.bf16.mxu1 %v1321_v27  ;;  %s1398_s16 = scalar_lea.vmem %s1397_s15, 4096  ;;  %p1399_p0 = scmp.lt.s32.totalorder %s2013_s22, %s1397_s15 }
  0x17   : > { %v297_v5 = vpack.c.bf16 %v282_v3, %v281_v2  ;;  %v284_v6 = vld [vmem:[%s1555_s21 + $0x18] sm:$0xff]  ;;  %v285_v7 = vld [vmem:[%s1555_s21 + $0x20] sm:$0xff]  ;;  %v286_v8 = vld [vmem:[%s1555_s21 + $0x28] sm:$0xff]  ;;  %p1395_p13 = pneg %p1394_p12  ;;  %p1400_p1 = scmp.lt.s32.totalorder %s1398_s16, %s1392_s9 }
  0x18   : > { %v298_v9 = vpack.c.bf16 %v284_v6, %v283_v4  ;;  %v299_v10 = vpack.c.bf16 %v286_v8, %v285_v7  ;;  %v287_v11 = vld [vmem:[%s1555_s21 + $0x30] sm:$0xff]  ;;  %v288_v12 = vld [vmem:[%s1555_s21 + $0x38] sm:$0xff]  ;;  %v289_v13 = vld [vmem:[%s1555_s21 + $0x40] sm:$0xff] }
  0x19   : > { %1212 = vmatpush3.bf16.msra.mxu0 %v1319_v1  ;;  %1213 = vmatprep.mubr.msk.bf16.mxu0 %vm328_vm0, %v297_v5  ;;  %v290_v14 = vld [vmem:[%s1555_s21 + $0x48] sm:$0xff]  ;;  %v300_v15 = vpack.c.bf16 %v288_v12, %v287_v11  ;;  %v291_v17 = vld [vmem:[%s1555_s21 + $0x50] sm:$0xff]  ;;  %v292_v18 = vld [vmem:[%s1555_s21 + $0x58] sm:$0xff]  ;;  %p1401_p2 = por %p1400_p1, %p1399_p0 }
  0x1a   : > { %v301_v16 = vpack.c.bf16 %v290_v14, %v289_v13  ;;  %v293_v19 = vld [vmem:[%s1555_s21 + $0x60] sm:$0xff]  ;;  %v294_v20 = vld [vmem:[%s1555_s21 + $0x68] sm:$0xff]  ;;  %v302_v21 = vpack.c.bf16 %v292_v18, %v291_v17  ;;  %v295_v23 = vld [vmem:[%s1555_s21 + $0x70] sm:$0xff]  ;;  %1229 = vmatprep.subr.bf16.mxu0 %v1320_v26  ;;  %1270 = vmatpush3.bf16.msra.mxu1 %v1321_v27 }
  0x1b   : > { %v303_v22 = vpack.c.bf16 %v294_v20, %v293_v19  ;;  %v296_v24 = vld [vmem:[%s1555_s21 + $0x78] sm:$0xff]  ;;  %1263 = vmatprep.subr.bf16.mxu1 %v1322_v28  ;;  %v1327_v33 = vld [vmem:[%s2063_s3] sm:$0xff]   ;;  %s1182_s21 = sshll.u32 %s1518_s28, 11  ;;  %s2020_s28 = scalar_lea.sflag [#allocation3], %s270_s14 }
  0x1c   : > { %1214 = vmatmul.mubr.msk.bf16.vlgmr.msra.gmra.mxu0 %vm328_vm0, %v298_v9  ;;  %v304_v25 = vpack.c.bf16 %v296_v24, %v295_v23  ;;  %v1608_v34 = vld [vmem:[%s2062_s2] ss:$0 sm:$0xff]  ;;  %s2011_s8 = scalar_lea.hbm %s2067_s7, %s1182_s21  ;;  %p1402_p3 = pnand %p1401_p2, %p1395_p13 }
  0x1d   : > { %1217 = vmatprep.mubr.msk.bf16.mxu0 %vm328_vm0, %v299_v10  ;;  %1230 = vmatpush3.bf16.msra.mxu0 %v1320_v26 }
  0x1e   : > { %1231 = vmatprep.subr.bf16.mxu0 %v1321_v27  ;;  %1271 = vmatpush3.bf16.msra.mxu1 %v1322_v28 }
  0x1f   : > { %1264 = vmatprep.subr.bf16.mxu1 %v1323_v29 }
  0x21   : > { %1232 = vmatpush3.bf16.msra.mxu0 %v1321_v27 }
  0x22   : > { %1233 = vmatprep.subr.bf16.mxu0 %v1322_v28  ;;  %1272 = vmatpush3.bf16.msra.mxu1 %v1323_v29 }
  0x23   : > { %1265 = vmatprep.subr.bf16.mxu1 %v1324_v30 }
  0x24   : > { %1218 = vmatmul.mubr.msk.bf16.gmra.mxu0 %vm328_vm0, %v300_v15 }
  0x25   : > { %1221 = vmatprep.mubr.msk.bf16.mxu0 %vm328_vm0, %v301_v16  ;;  %1234 = vmatpush3.bf16.msra.mxu0 %v1322_v28 }
  0x26   : > { %1235 = vmatprep.subr.bf16.mxu0 %v1323_v29  ;;  %1273 = vmatpush3.bf16.msra.mxu1 %v1324_v30 }
  0x27   : > { %1266 = vmatprep.subr.bf16.mxu1 %v1325_v31 }
  0x29   : > { %1236 = vmatpush3.bf16.msra.mxu0 %v1323_v29 }
  0x2a   : > { %1237 = vmatprep.subr.bf16.mxu0 %v1324_v30  ;;  %1274 = vmatpush3.bf16.msra.mxu1 %v1325_v31 }
  0x2b   : > { %1267 = vmatprep.subr.bf16.mxu1 %v1326_v32 }
  0x2c   : > { %1222 = vmatmul.mubr.msk.bf16.gmra.mxu0 %vm328_vm0, %v302_v21 }
  0x2d   : > { %1225 = vmatprep.mubr.msk.bf16.mxu0 %vm328_vm0, %v303_v22  ;;  %1238 = vmatpush3.bf16.msra.mxu0 %v1324_v30 }
  0x2e   : > { %1239 = vmatprep.subr.bf16.mxu0 %v1325_v31  ;;  %1275 = vmatpush3.bf16.msra.mxu1 %v1326_v32 }
  0x2f   : > { %1268 = vmatprep.subr.bf16.mxu1 %v1327_v33 }
  0x31   : > { %1240 = vmatpush3.bf16.msra.mxu0 %v1325_v31 }
  0x32   : > { %1241 = vmatprep.subr.bf16.mxu0 %v1326_v32  ;;  %1276 = vmatpush3.bf16.msra.mxu1 %v1327_v33 }
  0x34   : > { %1226 = vmatmul.mubr.msk.bf16.gmra.mxu0 %vm328_vm0, %v304_v25 }
  0x35   : > { %1242 = vmatpush3.bf16.msra.mxu0 %v1326_v32 }
  0x36   : > { %1243 = vmatprep.subr.bf16.mxu0 %v1327_v33 }
  0x39   : > { %1244 = vmatpush3.bf16.msra.mxu0 %v1327_v33 }
  0xdc   : > { %v1215_v35 = vpop.f32.mrf.mxu0 }
  0xdd   : > { %v1611_v36 = vadd.f32 %v1215_v35, %v1608_v34 }
  0xde   : > { %v387_v37 = vpop.f32.mrf.mxu0 }
  0xdf   : > { %v452_v38 = vmul.f32 %v1611_v36, %v1611_v36  ;;  %v1616_v39 = vadd.f32 %v1608_v34, %v387_v37 }
  0xe0   : > { %v1216_v40 = vpop.f32.mrf.mxu0 }
  0xe1   : > { %v468_v41 = vmul.f32 %v452_v38, %v1611_v36  ;;  %v450_v42 = vmul.f32 %v1616_v39, %v1616_v39  ;;  %v1622_v43 = vadd.f32 %v1216_v40, %v1608_v34 }
  0xe2   : > { %v390_v44 = vpop.f32.mrf.mxu0 }
  0xe3   : > { %v500_v45 = vmul.f32 0.044715, %v468_v41  ;;  %v466_v46 = vmul.f32 %v450_v42, %v1616_v39  ;;  %v453_v47 = vmul.f32 %v1622_v43, %v1622_v43  ;;  %v1628_v48 = vadd.f32 %v1608_v34, %v390_v44 }
  0xe4   : > { %v1219_v49 = vpop.f32.mrf.mxu0 }
  0xe5   : > { %v516_v50 = vadd.f32 %v500_v45, %v1611_v36  ;;  %v498_v51 = vmul.f32 0.044715, %v466_v46  ;;  %v469_v52 = vmul.f32 %v453_v47, %v1622_v43  ;;  %v1633_v53 = vadd.f32 %v1219_v49, %v1608_v34 }
  0xe6   : > { %v451_v54 = vmul.f32 %v1628_v48, %v1628_v48  ;;  %v403_v55 = vpop.f32.mrf.mxu0 }
  0xe7   : > { %v532_v56 = vmul.f32 0.7978846, %v516_v50  ;;  %v501_v57 = vmul.f32 0.044715, %v469_v52  ;;  %v456_v58 = vmul.f32 %v1633_v53, %v1633_v53  ;;  %v1640_v59 = vadd.f32 %v1608_v34, %v403_v55 }
  0xe8   : > { %v467_v60 = vmul.f32 %v451_v54, %v1628_v48  ;;  %v1220_v61 = vpop.f32.mrf.mxu0  ;;  %v514_v62 = vadd.f32 %v498_v51, %v1616_v39  ;;  %v484_v50 = vmul.f32 0.5, %v1611_v36 }
  0xe9   : > { %v517_v63 = vadd.f32 %v501_v57, %v1622_v43  ;;  %v472_v0 = vmul.f32 %v456_v58, %v1633_v53  ;;  %v1647_v1 = vadd.f32 %v1220_v61, %v1608_v34  ;;  %1328 = vtanh.f32 %v532_v56 }
  0xea   : > { %v499_v2 = vmul.f32 0.044715, %v467_v60  ;;  %v406_v3 = vpop.f32.mrf.mxu0  ;;  %v530_v4 = vmul.f32 0.7978846, %v514_v62  ;;  %v454_v5 = vmul.f32 %v1640_v59, %v1640_v59  ;;  %v485_v61 = vmul.f32 0.5, %v1622_v43 }
  0xeb   : > { %v533_v6 = vmul.f32 0.7978846, %v517_v63  ;;  %v504_v7 = vmul.f32 0.044715, %v472_v0  ;;  %v457_v8 = vmul.f32 %v1647_v1, %v1647_v1  ;;  %v1654_v9 = vadd.f32 %v1608_v34, %v406_v3 }
  0xec   : > { %v1223_v10 = vpop.f32.mrf.mxu0  ;;  %v515_v11 = vadd.f32 %v499_v2, %v1628_v48  ;;  %1330 = vtanh.f32 %v530_v4  ;;  %v470_v12 = vmul.f32 %v454_v5, %v1640_v59  ;;  %v482_v63 = vmul.f32 0.5, %v1616_v39 }
  0xed   : > { %1332 = vtanh.f32 %v533_v6  ;;  %v473_v13 = vmul.f32 %v457_v8, %v1647_v1  ;;  %v1660_v14 = vadd.f32 %v1223_v10, %v1608_v34  ;;  %v455_v15 = vmul.f32 %v1654_v9, %v1654_v9 }
  0xee   : > { %v419_v16 = vpop.f32.mrf.mxu0  ;;  %v531_v17 = vmul.f32 0.7978846, %v515_v11  ;;  %v502_v18 = vmul.f32 0.044715, %v470_v12  ;;  %v520_v19 = vadd.f32 %v504_v7, %v1633_v53  ;;  %v483_v6 = vmul.f32 0.5, %v1628_v48 }
  0xef   : > { %v505_v20 = vmul.f32 0.044715, %v473_v13  ;;  %v460_v21 = vmul.f32 %v1660_v14, %v1660_v14  ;;  %v1668_v22 = vadd.f32 %v1608_v34, %v419_v16  ;;  %v471_v23 = vmul.f32 %v455_v15, %v1654_v9 }
  0xf0   : > { %v1224_v24 = vpop.f32.mrf.mxu0  ;;  %1334 = vtanh.f32 %v531_v17  ;;  %v518_v25 = vadd.f32 %v502_v18, %v1640_v59  ;;  %v536_v26 = vmul.f32 0.7978846, %v520_v19 }
  0xf1   : > { %v476_v27 = vmul.f32 %v460_v21, %v1660_v14  ;;  %v458_v28 = vmul.f32 %v1668_v22, %v1668_v22  ;;  %v1676_v29 = vadd.f32 %v1224_v24, %v1608_v34  ;;  %v503_v30 = vmul.f32 0.044715, %v471_v23 }
  0xf2   : > { %v422_v31 = vpop.f32.mrf.mxu0  ;;  %v534_v32 = vmul.f32 0.7978846, %v518_v25  ;;  %v521_v33 = vadd.f32 %v505_v20, %v1647_v1  ;;  %1336 = vtanh.f32 %v536_v26 }
  0xf3   : > { %v508_v35 = vmul.f32 0.044715, %v476_v27  ;;  %v474_v37 = vmul.f32 %v458_v28, %v1668_v22  ;;  %v461_v38 = vmul.f32 %v1676_v29, %v1676_v29  ;;  %v1683_v40 = vadd.f32 %v1608_v34, %v422_v31 }
  0xf4   : > { %v1227_v41 = vpop.f32.mrf.mxu0  ;;  %v519_v42 = vadd.f32 %v503_v30, %v1654_v9  ;;  %1338 = vtanh.f32 %v534_v32  ;;  %v537_v44 = vmul.f32 0.7978846, %v521_v33 }
  0xf5   : > { %v506_v45 = vmul.f32 0.044715, %v474_v37  ;;  %v477_v46 = vmul.f32 %v461_v38, %v1676_v29  ;;  %v459_v47 = vmul.f32 %v1683_v40, %v1683_v40  ;;  %v1690_v49 = vadd.f32 %v1227_v41, %v1608_v34 }
  0xf6   : > { %v435_v51 = vpop.f32.mrf.mxu0  ;;  %v535_v52 = vmul.f32 0.7978846, %v519_v42  ;;  %1340 = vtanh.f32 %v537_v44  ;;  %v524_v54 = vadd.f32 %v508_v35, %v1660_v14  ;;  %v1329_v55 = vpop.eup %1328 }
  0xf7   : > { %v509_v56 = vmul.f32 0.044715, %v477_v46  ;;  %v475_v57 = vmul.f32 %v459_v47, %v1683_v40  ;;  %v464_v58 = vmul.f32 %v1690_v49, %v1690_v49  ;;  %v1698_v60 = vadd.f32 %v1608_v34, %v435_v51 }
  0xf8   : > { %v1228_v62 = vpop.f32.mrf.mxu0  ;;  %1342 = vtanh.f32 %v535_v52  ;;  %v522_v0 = vadd.f32 %v506_v45, %v1668_v22  ;;  %v564_v10 = vadd.f32 1.0, %v1329_v55  ;;  %v540_v13 = vmul.f32 0.7978846, %v524_v54 }
  0xf9   : > { %v1331_v2 = vpop.eup %1330  ;;  %v507_v3 = vmul.f32 0.044715, %v475_v57  ;;  %v462_v4 = vmul.f32 %v1698_v60, %v1698_v60  ;;  %v1706_v5 = vadd.f32 %v1228_v62, %v1608_v34  ;;  %v525_v12 = vadd.f32 %v509_v56, %v1676_v29 }
  0xfa   : > { %v1333_v7 = vpop.eup %1332  ;;  %v438_v8 = vpop.f32.mrf.mxu0  ;;  %v538_v11 = vmul.f32 0.7978846, %v522_v0  ;;  %v480_v15 = vmul.f32 %v464_v58, %v1690_v49  ;;  %v562_v19 = vadd.f32 1.0, %v1331_v2  ;;  %v580_v41 = vmul.f32 %v564_v10, %v484_v50 }
  0xfb   : > { %v478_v16 = vmul.f32 %v462_v4, %v1698_v60  ;;  %v465_v17 = vmul.f32 %v1706_v5, %v1706_v5  ;;  %v1715_v18 = vadd.f32 %v1608_v34, %v438_v8  ;;  %v565_v20 = vadd.f32 1.0, %v1333_v7 }
  0xfc   : > { %v523_v21 = vadd.f32 %v507_v3, %v1683_v40  ;;  %1344 = vtanh.f32 %v538_v11  ;;  %v541_v27 = vmul.f32 0.7978846, %v525_v12  ;;  %v512_v34 = vmul.f32 0.044715, %v480_v15 }
  0xfd   : > { %v1335_v23 = vpop.eup %1334  ;;  %v510_v24 = vmul.f32 0.044715, %v478_v16  ;;  %v481_v25 = vmul.f32 %v465_v17, %v1706_v5  ;;  %v463_v26 = vmul.f32 %v1715_v18, %v1715_v18  ;;  %v581_v30 = vmul.f32 %v565_v20, %v485_v61 }
  0xfe   : > { %v563_v28 = vadd.f32 1.0, %v1335_v23  ;;  %v539_v31 = vmul.f32 0.7978846, %v523_v21  ;;  %1346 = vtanh.f32 %v540_v13  ;;  %v578_v37 = vmul.f32 %v562_v19, %v482_v63 }
  0xff   : > { %v1337_v32 = vpop.eup %1336  ;;  %v513_v33 = vmul.f32 0.044715, %v481_v25  ;;  %v479_v35 = vmul.f32 %v463_v26, %v1715_v18  ;;  %1348 = vtanh.f32 %v541_v27  ;;  %v526_v45 = vadd.f32 %v510_v24, %v1698_v60 }
 0x100   : > { %v579_v38 = vmul.f32 %v563_v28, %v483_v6  ;;  %1350 = vtanh.f32 %v539_v31  ;;  %v595_v47 = vpack.c.bf16 %v581_v30, %v580_v41  ;;  %v528_v55 = vadd.f32 %v512_v34, %v1690_v49 }
 0x101   : > { %v1339_v42 = vpop.eup %1338  ;;  %v511_v44 = vmul.f32 0.044715, %v479_v35  ;;  %v542_v54 = vmul.f32 0.7978846, %v526_v45  ;;  %v529_v56 = vadd.f32 %v513_v33, %v1706_v5  ;;  %v489_v58 = vmul.f32 0.5, %v1647_v1 }
 0x102   : > { %v594_v46 = vpack.c.bf16 %v579_v38, %v578_v37  ;;  %v566_v57 = vadd.f32 1.0, %v1339_v42  ;;  %v568_v50 = vadd.f32 1.0, %v1337_v32  ;;  %v544_v0 = vmul.f32 0.7978846, %v528_v55 }
 0x103   : > { %v1341_v51 = vpop.eup %1340  ;;  %v527_v52 = vadd.f32 %v511_v44, %v1715_v18  ;;  %1352 = vtanh.f32 %v542_v54  ;;  %v545_v2 = vmul.f32 0.7978846, %v529_v56  ;;  %v486_v3 = vmul.f32 0.5, %v1640_v59 }
 0x104   : > { %1245 = vmatprep.mubr.bf16.mxu0 %v594_v46  ;;  %v569_v61 = vadd.f32 1.0, %v1341_v51  ;;  %v487_v4 = vmul.f32 0.5, %v1654_v9  ;;  %v488_v7 = vmul.f32 0.5, %v1633_v53  ;;  %v493_v23 = vmul.f32 0.5, %v1676_v29 }
 0x105   : > { %v1343_v62 = vpop.eup %1342  ;;  %1246 = vmatmul.mubr.bf16.vlgmr.msra.gmra.mxu0 %v595_v47  ;;  %v543_v63 = vmul.f32 0.7978846, %v527_v52  ;;  %v582_v10 = vmul.f32 %v566_v57, %v486_v3  ;;  %v490_v26 = vmul.f32 0.5, %v1668_v22  ;;  %v491_v27 = vmul.f32 0.5, %v1683_v40 }
 0x106   : > { %v567_v6 = vadd.f32 1.0, %v1343_v62  ;;  %v585_v8 = vmul.f32 %v569_v61, %v489_v58  ;;  %v584_v13 = vmul.f32 %v568_v50, %v488_v7  ;;  %v492_v30 = vmul.f32 0.5, %v1660_v14 }
 0x107   : > { %1354 = vtanh.f32 %v543_v63  ;;  %v494_v45 = vmul.f32 0.5, %v1698_v60  ;;  %v495_v46 = vmul.f32 0.5, %v1715_v18  ;;  %v496_v52 = vmul.f32 0.5, %v1690_v49 }
 0x108   : > { %v583_v11 = vmul.f32 %v567_v6, %v487_v4  ;;  %1356 = vtanh.f32 %v544_v0  ;;  %v597_v17 = vpack.c.bf16 %v585_v8, %v584_v13  ;;  %v497_v57 = vmul.f32 0.5, %v1706_v5  ;;  %v1741_v0 = vld [vmem:[%s2064_s4] ss:$0 sm:$0xff] }
 0x109   : > { %v1345_v12 = vpop.eup %1344  ;;  %1358 = vtanh.f32 %v545_v2 }
 0x10a   : > { %v596_v15 = vpack.c.bf16 %v583_v11, %v582_v10  ;;  %v570_v20 = vadd.f32 1.0, %v1345_v12 }
 0x10b   : > { %v1347_v16 = vpop.eup %1346 }
 0x10c   : > { %v1349_v19 = vpop.eup %1348  ;;  %1249 = vmatprep.mubr.bf16.mxu1 %v596_v15  ;;  %v572_v24 = vadd.f32 1.0, %v1347_v16  ;;  %v586_v32 = vmul.f32 %v570_v20, %v490_v26 }
 0x10d   : > { %v1351_v21 = vpop.eup %1350  ;;  %1250 = vmatmul.mubr.bf16.vlgmr.msra.gmra.mxu1 %v597_v17  ;;  %v573_v25 = vadd.f32 1.0, %v1349_v19 }
 0x10e   : > { %v571_v28 = vadd.f32 1.0, %v1351_v21  ;;  %v588_v33 = vmul.f32 %v572_v24, %v492_v30 }
 0x10f   : > { %v589_v31 = vmul.f32 %v573_v25, %v493_v23 }
 0x110   : > { %v587_v34 = vmul.f32 %v571_v28, %v491_v27  ;;  %v1353_v35 = vpop.eup %1352 }
 0x111   : > { %v599_v38 = vpack.c.bf16 %v589_v31, %v588_v33  ;;  %v574_v41 = vadd.f32 1.0, %v1353_v35 }
 0x112   : > { %v598_v37 = vpack.c.bf16 %v587_v34, %v586_v32 }
 0x113   : > { %v590_v55 = vmul.f32 %v574_v41, %v494_v45 }
 0x114   : > { %v1355_v42 = vpop.eup %1354  ;;  %1253 = vmatprep.mubr.bf16.mxu1 %v598_v37 }
 0x115   : > { %v1357_v44 = vpop.eup %1356  ;;  %1254 = vmatmul.mubr.bf16.gmra.mxu1 %v599_v38  ;;  %v575_v47 = vadd.f32 1.0, %v1355_v42 }
 0x116   : > { %v1359_v51 = vpop.eup %1358  ;;  %v576_v54 = vadd.f32 1.0, %v1357_v44 }
 0x117   : > { %v591_v56 = vmul.f32 %v575_v47, %v495_v46  ;;  %v577_v58 = vadd.f32 1.0, %v1359_v51 }
 0x118   : > { %v592_v61 = vmul.f32 %v576_v54, %v496_v52 }
 0x119   : > { %v600_v50 = vpack.c.bf16 %v591_v56, %v590_v55  ;;  %v593_v62 = vmul.f32 %v577_v58, %v497_v57 }
 0x11b   : > { %1257 = vmatprep.mubr.bf16.mxu1 %v600_v50  ;;  %v601_v63 = vpack.c.bf16 %v593_v62, %v592_v61 }
 0x11d   : > { %1258 = vmatmul.mubr.bf16.gmra.mxu1 %v601_v63 }
 0x1c5   : > { %v1247_v2 = vpop.f32.mrf.mxu0 }
 0x1c6   : > { %v716_v3 = vadd.f32 %v1247_v2, %v1741_v0 }
 0x1c7   : > { %v707_v4 = vpop.f32.mrf.mxu0 }
 0x1c8   : > { %v1745_v6 = vadd.f32 %v716_v3, %v1611_v36  ;;  %v708_v7 = vadd.f32 %v1741_v0, %v707_v4 }
 0x1c9   : > { %v1248_v8 = vpop.f32.mrf.mxu0 }
 0x1ca   : > { %v1749_v10 = vadd.f32 %v708_v7, %v1616_v39  ;;  %v719_v11 = vadd.f32 %v1248_v8, %v1741_v0  ;;  %790 = vadd.xlane.f32.xlu1 %v1745_v6  ;;  %v820_v16 = vmul.f32 %v1745_v6, %v1745_v6 }
 0x1cb   : > { %v710_v12 = vpop.f32.mrf.mxu0 }
 0x1cc   : > { %v1754_v13 = vadd.f32 %v719_v11, %v1622_v43  ;;  %v711_v15 = vadd.f32 %v1741_v0, %v710_v12  ;;  %786 = vadd.xlane.f32.xlu0 %v1749_v10  ;;  %v818_v20 = vmul.f32 %v1749_v10, %v1749_v10 }
 0x1cd   : > { %v1251_v36 = vpop.f32.mrf.mxu1 }
 0x1ce   : > { %792 = vadd.xlane.f32.xlu1 %v1754_v13  ;;  %v1762_v17 = vadd.f32 %v711_v15, %v1628_v48  ;;  %v821_v19 = vmul.f32 %v1754_v13, %v1754_v13  ;;  %v732_v25 = vadd.f32 %v1251_v36, %v1741_v0 }
 0x1cf   : > { %v723_v39 = vpop.f32.mrf.mxu1 }
 0x1d0   : > { %838 = vadd.xlane.f32.xlu0 %v820_v16  ;;  %v819_v23 = vmul.f32 %v1762_v17, %v1762_v17  ;;  %v1778_v28 = vadd.f32 %v732_v25, %v1633_v53  ;;  %v724_v30 = vadd.f32 %v1741_v0, %v723_v39 }
 0x1d1   : > { %v1252_v43 = vpop.f32.mrf.mxu1 }
 0x1d2   : > { %840 = vadd.xlane.f32.xlu1 %v821_v19  ;;  %v735_v21 = vadd.f32 %v1252_v43, %v1741_v0  ;;  %v824_v33 = vmul.f32 %v1778_v28, %v1778_v28 }
 0x1d3   : > { %v726_v24 = vpop.f32.mrf.mxu1 }
 0x1d4   : > { %834 = vadd.xlane.f32.xlu0 %v818_v20  ;;  %v1773_v48 = vadd.f32 %v735_v21, %v1647_v1  ;;  %v727_v26 = vadd.f32 %v1741_v0, %v726_v24  ;;  %v1787_v1 = vadd.f32 %v724_v30, %v1640_v59 }
 0x1d5   : > { %v1255_v27 = vpop.f32.mrf.mxu1 }
 0x1d6   : > { %836 = vadd.xlane.f32.xlu1 %v819_v23  ;;  %v1783_v31 = vadd.f32 %v727_v26, %v1654_v9  ;;  %v825_v53 = vmul.f32 %v1773_v48, %v1773_v48  ;;  %v748_v37 = vadd.f32 %v1255_v27, %v1741_v0  ;;  %v822_v38 = vmul.f32 %v1787_v1, %v1787_v1 }
 0x1d7   : > { %v739_v32 = vpop.f32.mrf.mxu1 }
 0x1d8   : > { %788 = vadd.xlane.f32.xlu0 %v1762_v17  ;;  %v823_v35 = vmul.f32 %v1783_v31, %v1783_v31  ;;  %v1806_v45 = vadd.f32 %v748_v37, %v1660_v14  ;;  %v740_v46 = vadd.f32 %v1741_v0, %v739_v32 }
 0x1d9   : > { %v1256_v34 = vpop.f32.mrf.mxu1 }
 0x1da   : > { %800 = vadd.xlane.f32.xlu1 %v1773_v48  ;;  %v751_v9 = vadd.f32 %v1256_v34, %v1741_v0  ;;  %v828_v54 = vmul.f32 %v1806_v45, %v1806_v45 }
 0x1db   : > { %v742_v59 = vpop.f32.mrf.mxu1 }
 0x1dc   : > { %798 = vadd.xlane.f32.xlu0 %v1778_v28  ;;  %v1802_v41 = vadd.f32 %v751_v9, %v1676_v29  ;;  %v743_v42 = vadd.f32 %v1741_v0, %v742_v59  ;;  %v1815_v29 = vadd.f32 %v740_v46, %v1668_v22 }
 0x1dd   : > { %v1259_v44 = vpop.f32.mrf.mxu1 }
 0x1de   : > { %796 = vadd.xlane.f32.xlu1 %v1783_v31  ;;  %v1811_v47 = vadd.f32 %v743_v42, %v1683_v40  ;;  %v829_v14 = vmul.f32 %v1802_v41, %v1802_v41  ;;  %v764_v56 = vadd.f32 %v1259_v44, %v1741_v0  ;;  %v826_v57 = vmul.f32 %v1815_v29, %v1815_v29 }
 0x1df   : > { %v755_v51 = vpop.f32.mrf.mxu1 }
 0x1e0   : > { %794 = vadd.xlane.f32.xlu0 %v1787_v1  ;;  %v827_v55 = vmul.f32 %v1811_v47, %v1811_v47  ;;  %v1834_v61 = vadd.f32 %v764_v56, %v1690_v49  ;;  %v756_v62 = vadd.f32 %v1741_v0, %v755_v51 }
 0x1e1   : > { %v1260_v52 = vpop.f32.mrf.mxu1 }
 0x1e2   : > { %848 = vadd.xlane.f32.xlu1 %v825_v53  ;;  %v767_v40 = vadd.f32 %v1260_v52, %v1741_v0  ;;  %v1843_v2 = vadd.f32 %v756_v62, %v1698_v60  ;;  %v832_v60 = vmul.f32 %v1834_v61, %v1834_v61 }
 0x1e3   : > { %v758_v22 = vpop.f32.mrf.mxu1 }
 0x1e4   : > { %846 = vadd.xlane.f32.xlu0 %v824_v33  ;;  %v1830_v58 = vadd.f32 %v767_v40, %v1706_v5  ;;  %v759_v50 = vadd.f32 %v1741_v0, %v758_v22  ;;  %v830_v5 = vmul.f32 %v1843_v2, %v1843_v2 }
 0x1e6   : > { %844 = vadd.xlane.f32.xlu1 %v823_v35  ;;  %v1839_v63 = vadd.f32 %v759_v50, %v1715_v18  ;;  %v833_v18 = vmul.f32 %v1830_v58, %v1830_v58 }
 0x1e8   : > { %842 = vadd.xlane.f32.xlu0 %v822_v38  ;;  %v831_v49 = vmul.f32 %v1839_v63, %v1839_v63 }
 0x1ea   : > { %808 = vadd.xlane.f32.xlu1 %v1802_v41 }
 0x1ec   : > { %806 = vadd.xlane.f32.xlu0 %v1806_v45 }
 0x1ee   : > { %804 = vadd.xlane.f32.xlu1 %v1811_v47 }
 0x1f0   : > { %802 = vadd.xlane.f32.xlu0 %v1815_v29 }
 0x1f2   : > { %856 = vadd.xlane.f32.xlu1 %v829_v14 }
 0x1f4   : > { %854 = vadd.xlane.f32.xlu0 %v828_v54 }
 0x1f6   : > { %852 = vadd.xlane.f32.xlu1 %v827_v55 }
 0x1f8   : > { %850 = vadd.xlane.f32.xlu0 %v826_v57 }
 0x1fa   : > { %816 = vadd.xlane.f32.xlu1 %v1830_v58 }
 0x1fc   : > { %814 = vadd.xlane.f32.xlu0 %v1834_v61 }
 0x1fe   : > { %812 = vadd.xlane.f32.xlu1 %v1839_v63 }
 0x200   : > { %810 = vadd.xlane.f32.xlu0 %v1843_v2 }
 0x202   : > { %860 = vadd.xlane.f32.xlu1 %v831_v49 }
 0x204   : > { %858 = vadd.xlane.f32.xlu0 %v830_v5 }
 0x206   : > { %864 = vadd.xlane.f32.xlu1 %v833_v18 }
 0x208   : > { %862 = vadd.xlane.f32.xlu0 %v832_v60 }
 0x253   : > { %v791_v0 = vpop.xlane.xlu1 %790 }
 0x254   : > { %v868_v4 = vmul.f32 0.0078125, %v791_v0 }
 0x255   : > { %v787_v3 = vpop.xlane.xlu0 %786 }
 0x256   : > { %v900_v12 = vmul.f32 %v868_v4, %v868_v4  ;;  %v1857_v15 = vmul.f32 0.0078125, %v787_v3  ;;  %v948_v62 = vsub.f32 %v1745_v6, %v868_v4  ;;  %v1884_v3 = vld [vmem:[%s2065_s5] ss:$0 sm:$0xff] }
 0x257   : > { %v793_v7 = vpop.xlane.xlu1 %792 }
 0x258   : > { %v1855_v8 = vmul.f32 0.0078125, %v793_v7  ;;  %v898_v21 = vmul.f32 %v1857_v15, %v1857_v15 }
 0x259   : > { %v839_v11 = vpop.xlane.xlu0 %838 }
 0x25a   : > { %v884_v36 = vmul.f32 0.0078125, %v839_v11  ;;  %v901_v39 = vmul.f32 %v1855_v8, %v1855_v8  ;;  %v949_v0 = vsub.f32 %v1754_v13, %v1855_v8  ;;  %v1895_v13 = vld [vmem:[%s2066_s6] ss:$0 sm:$0xff] }
 0x25b   : > { %v841_v16 = vpop.xlane.xlu1 %840 }
 0x25c   : > { %v916_v19 = vsub.f32 %v884_v36, %v900_v12  ;;  %v885_v43 = vmul.f32 0.0078125, %v841_v16 }
 0x25d   : > { %v835_v20 = vpop.xlane.xlu0 %834 }
 0x25e   : > { %v932_v23 = vmax.f32 %v916_v19, 0.0  ;;  %v917_v24 = vsub.f32 %v885_v43, %v901_v39  ;;  %v882_v25 = vmul.f32 0.0078125, %v835_v20  ;;  %v946_v39 = vsub.f32 %v1749_v10, %v1857_v15 }
 0x25f   : > { %v837_v26 = vpop.xlane.xlu1 %836 }
 0x260   : > { %v964_v27 = vadd.f32 1e-05, %v932_v23  ;;  %v933_v30 = vmax.f32 %v917_v24, 0.0  ;;  %v914_v32 = vsub.f32 %v882_v25, %v898_v21  ;;  %v883_v37 = vmul.f32 0.0078125, %v837_v26 }
 0x261   : > { %v789_v53 = vpop.xlane.xlu0 %788 }
 0x262   : > { %1360 = vrsqrt.f32 %v964_v27  ;;  %v965_v34 = vadd.f32 1e-05, %v933_v30  ;;  %v930_v33 = vmax.f32 %v914_v32, 0.0  ;;  %v1863_v9 = vmul.f32 0.0078125, %v789_v53 }
 0x263   : > { %v801_v35 = vpop.xlane.xlu1 %800 }
 0x264   : > { %1362 = vrsqrt.f32 %v965_v34  ;;  %v962_v59 = vadd.f32 1e-05, %v930_v33  ;;  %v899_v38 = vmul.f32 %v1863_v9, %v1863_v9  ;;  %v1867_v14 = vmul.f32 0.0078125, %v801_v35 }
 0x265   : > { %v799_v42 = vpop.xlane.xlu0 %798 }
 0x266   : > { %1364 = vrsqrt.f32 %v962_v59  ;;  %v915_v44 = vsub.f32 %v883_v37, %v899_v38  ;;  %v1869_v40 = vmul.f32 0.0078125, %v799_v42  ;;  %v905_v22 = vmul.f32 %v1867_v14, %v1867_v14 }
 0x267   : > { %v797_v46 = vpop.xlane.xlu1 %796 }
 0x268   : > { %v931_v51 = vmax.f32 %v915_v44, 0.0  ;;  %v1874_v57 = vmul.f32 0.0078125, %v797_v46  ;;  %v904_v49 = vmul.f32 %v1869_v40, %v1869_v40 }
 0x269   : > { %v795_v52 = vpop.xlane.xlu0 %794 }
 0x26a   : > { %v963_v54 = vadd.f32 1e-05, %v931_v51  ;;  %v1886_v7 = vmul.f32 0.0078125, %v795_v52  ;;  %v903_v8 = vmul.f32 %v1874_v57, %v1874_v57  ;;  %v947_v51 = vsub.f32 %v1762_v17, %v1863_v9 }
 0x26b   : > { %v849_v55 = vpop.xlane.xlu1 %848 }
 0x26c   : > { %1366 = vrsqrt.f32 %v963_v54  ;;  %v889_v56 = vmul.f32 0.0078125, %v849_v55  ;;  %v902_v25 = vmul.f32 %v1886_v7, %v1886_v7 }
 0x26d   : > { %v847_v50 = vpop.xlane.xlu0 %846 }
 0x26e   : > { %v921_v5 = vsub.f32 %v889_v56, %v905_v22  ;;  %v888_v18 = vmul.f32 0.0078125, %v847_v50 }
 0x26f   : > { %v1361_v60 = vpop.eup %1360  ;;  %v845_v11 = vpop.xlane.xlu1 %844 }
 0x270   : > { %v996_v6 = vmul.f32 %v1361_v60, %v948_v62  ;;  %v937_v4 = vmax.f32 %v921_v5, 0.0  ;;  %v920_v12 = vsub.f32 %v888_v18, %v904_v49  ;;  %v887_v36 = vmul.f32 0.0078125, %v845_v11 }
 0x271   : > { %v1363_v16 = vpop.eup %1362  ;;  %v843_v19 = vpop.xlane.xlu0 %842 }
 0x272   : > { %v1019_v43 = vmul.f32 %v1884_v3, %v996_v6  ;;  %v997_v20 = vmul.f32 %v1363_v16, %v949_v0  ;;  %v969_v21 = vadd.f32 1e-05, %v937_v4  ;;  %v936_v23 = vmax.f32 %v920_v12, 0.0 }
 0x273   : > { %v1365_v24 = vpop.eup %1364  ;;  %v919_v26 = vsub.f32 %v887_v36, %v903_v8  ;;  %v886_v10 = vmul.f32 0.0078125, %v843_v19  ;;  %v809_v15 = vpop.xlane.xlu1 %808  ;;  %v953_v4 = vsub.f32 %v1773_v48, %v1867_v14 }
 0x274   : > { %v1042_v27 = vadd.f32 %v1895_v13, %v1019_v43  ;;  %v1020_v30 = vmul.f32 %v1884_v3, %v997_v20  ;;  %v994_v32 = vmul.f32 %v1365_v24, %v946_v39  ;;  %1368 = vrsqrt.f32 %v969_v21 }
 0x275   : > { %v968_v53 = vadd.f32 1e-05, %v936_v23  ;;  %v935_v34 = vmax.f32 %v919_v26, 0.0  ;;  %v918_v33 = vsub.f32 %v886_v10, %v902_v25  ;;  %v807_v35 = vpop.xlane.xlu0 %806  ;;  %v1913_v52 = vmul.f32 0.0078125, %v809_v15 }
 0x276   : > { %1058 = vst [vmem:[%s1904_s20 + $0x10] sm:$0xff] %v1042_v27  ;;  %v1043_v59 = vadd.f32 %v1895_v13, %v1020_v30  ;;  %v1017_v37 = vmul.f32 %v1884_v3, %v994_v32  ;;  %v1916_v50 = vmul.f32 0.0078125, %v807_v35  ;;  %v952_v26 = vsub.f32 %v1778_v28, %v1869_v40 }
 0x277   : > { %1370 = vrsqrt.f32 %v968_v53  ;;  %v967_v38 = vadd.f32 1e-05, %v935_v34  ;;  %v934_v42 = vmax.f32 %v918_v33, 0.0  ;;  %v805_v44 = vpop.xlane.xlu1 %804  ;;  %v909_v5 = vmul.f32 %v1913_v52, %v1913_v52 }
 0x278   : > { %1059 = vst [vmem:[%s1904_s20 + $0x18] sm:$0xff] %v1043_v59  ;;  %v1040_v46 = vadd.f32 %v1895_v13, %v1017_v37  ;;  %v1921_v18 = vmul.f32 0.0078125, %v805_v44  ;;  %v908_v0 = vmul.f32 %v1916_v50, %v1916_v50  ;;  %v951_v53 = vsub.f32 %v1783_v31, %v1874_v57 }
 0x279   : > { %v1367_v54 = vpop.eup %1366  ;;  %1372 = vrsqrt.f32 %v967_v38  ;;  %v966_v55 = vadd.f32 1e-05, %v934_v42  ;;  %v803_v22 = vpop.xlane.xlu0 %802  ;;  %v950_v37 = vsub.f32 %v1787_v1, %v1886_v7 }
 0x27a   : > { %1056 = vst [vmem:[%s1904_s20] sm:$0xff] %v1040_v46  ;;  %v995_v56 = vmul.f32 %v1367_v54, %v947_v51  ;;  %v1928_v12 = vmul.f32 0.0078125, %v803_v22  ;;  %v907_v16 = vmul.f32 %v1921_v18, %v1921_v18 }
 0x27b   : > { %1374 = vrsqrt.f32 %v966_v55  ;;  %v857_v62 = vpop.xlane.xlu1 %856 }
 0x27c   : > { %v1018_v49 = vmul.f32 %v1884_v3, %v995_v56  ;;  %v893_v17 = vmul.f32 0.0078125, %v857_v62  ;;  %v906_v48 = vmul.f32 %v1928_v12, %v1928_v12 }
 0x27d   : > { %v855_v9 = vpop.xlane.xlu0 %854 }
 0x27e   : > { %v1041_v60 = vadd.f32 %v1895_v13, %v1018_v49  ;;  %v925_v11 = vsub.f32 %v893_v17, %v909_v5  ;;  %v892_v6 = vmul.f32 0.0078125, %v855_v9 }
 0x27f   : > { %v853_v36 = vpop.xlane.xlu1 %852 }
 0x280   : > { %1057 = vst [vmem:[%s1904_s20 + $0x8] sm:$0xff] %v1041_v60  ;;  %v941_v39 = vmax.f32 %v925_v11, 0.0  ;;  %v924_v8 = vsub.f32 %v892_v6, %v908_v0  ;;  %v891_v19 = vmul.f32 0.0078125, %v853_v36 }
 0x281   : > { %v1369_v43 = vpop.eup %1368  ;;  %v851_v20 = vpop.xlane.xlu0 %850 }
 0x282   : > { %v1001_v21 = vmul.f32 %v1369_v43, %v953_v4  ;;  %v973_v23 = vadd.f32 1e-05, %v941_v39  ;;  %v940_v24 = vmax.f32 %v924_v8, 0.0  ;;  %v923_v25 = vsub.f32 %v891_v19, %v907_v16 }
 0x283   : > { %v890_v14 = vmul.f32 0.0078125, %v851_v20  ;;  %v817_v10 = vpop.xlane.xlu1 %816  ;;  %v957_v39 = vsub.f32 %v1802_v41, %v1913_v52 }
 0x284   : > { %v1371_v15 = vpop.eup %1370  ;;  %v1024_v27 = vmul.f32 %v1884_v3, %v1001_v21  ;;  %1376 = vrsqrt.f32 %v973_v23  ;;  %v972_v30 = vadd.f32 1e-05, %v940_v24  ;;  %v939_v32 = vmax.f32 %v923_v25, 0.0 }
 0x285   : > { %v1000_v34 = vmul.f32 %v1371_v15, %v952_v26  ;;  %v922_v33 = vsub.f32 %v890_v14, %v906_v48  ;;  %v815_v35 = vpop.xlane.xlu0 %814  ;;  %v1954_v5 = vmul.f32 0.0078125, %v817_v10  ;;  %v956_v21 = vsub.f32 %v1806_v45, %v1916_v50 }
 0x286   : > { %v1373_v59 = vpop.eup %1372  ;;  %v1047_v28 = vadd.f32 %v1895_v13, %v1024_v27  ;;  %1378 = vrsqrt.f32 %v972_v30  ;;  %v971_v40 = vadd.f32 1e-05, %v939_v32  ;;  %v1963_v4 = vmul.f32 0.0078125, %v815_v35 }
 0x287   : > { %v1023_v38 = vmul.f32 %v1884_v3, %v1000_v34  ;;  %v999_v42 = vmul.f32 %v1373_v59, %v951_v53  ;;  %v938_v44 = vmax.f32 %v922_v33, 0.0  ;;  %v813_v46 = vpop.xlane.xlu1 %812  ;;  %v913_v8 = vmul.f32 %v1954_v5, %v1954_v5 }
 0x288   : > { %v1375_v51 = vpop.eup %1374  ;;  %1063 = vst [vmem:[%s1904_s20 + $0x38] sm:$0xff] %v1047_v28  ;;  %1380 = vrsqrt.f32 %v971_v40  ;;  %v1947_v56 = vmul.f32 0.0078125, %v813_v46  ;;  %v955_v15 = vsub.f32 %v1811_v47, %v1921_v18  ;;  %v912_v41 = vmul.f32 %v1963_v4, %v1963_v4 }
 0x289   : > { %v1046_v31 = vadd.f32 %v1895_v13, %v1023_v38  ;;  %v1022_v57 = vmul.f32 %v1884_v3, %v999_v42  ;;  %v998_v54 = vmul.f32 %v1375_v51, %v950_v37  ;;  %v970_v55 = vadd.f32 1e-05, %v938_v44  ;;  %v811_v22 = vpop.xlane.xlu0 %810 }
 0x28a   : > { %v1949_v1 = vmul.f32 0.0078125, %v811_v22  ;;  %v911_v9 = vmul.f32 %v1947_v56, %v1947_v56  ;;  %v954_v47 = vsub.f32 %v1815_v29, %v1928_v12  ;;  %v959_v12 = vsub.f32 %v1839_v63, %v1947_v56 }
 0x28b   : > { %1062 = vst [vmem:[%s1904_s20 + $0x30] sm:$0xff] %v1046_v31  ;;  %v1045_v7 = vadd.f32 %v1895_v13, %v1022_v57  ;;  %v1021_v62 = vmul.f32 %v1884_v3, %v998_v54  ;;  %1382 = vrsqrt.f32 %v970_v55  ;;  %v861_v49 = vpop.xlane.xlu1 %860  ;;  %v961_v22 = vsub.f32 %v1830_v58, %v1954_v5 }
 0x28c   : > { %v895_v60 = vmul.f32 0.0078125, %v861_v49  ;;  %v910_v11 = vmul.f32 %v1949_v1, %v1949_v1  ;;  %v958_v31 = vsub.f32 %v1843_v2, %v1949_v1  ;;  %v960_v63 = vsub.f32 %v1834_v61, %v1963_v4 }
 0x28d   : > { %1061 = vst [vmem:[%s1904_s20 + $0x28] sm:$0xff] %v1045_v7  ;;  %v1044_v17 = vadd.f32 %v1895_v13, %v1021_v62  ;;  %v859_v0 = vpop.xlane.xlu0 %858 }
 0x28e   : > { %v894_v6 = vmul.f32 0.0078125, %v859_v0  ;;  %v927_v36 = vsub.f32 %v895_v60, %v911_v9 }
 0x28f   : > { %1060 = vst [vmem:[%s1904_s20 + $0x20] sm:$0xff] %v1044_v17  ;;  %v865_v16 = vpop.xlane.xlu1 %864 }
 0x290   : > { %v926_v19 = vsub.f32 %v894_v6, %v910_v11  ;;  %v897_v43 = vmul.f32 0.0078125, %v865_v16  ;;  %v943_v23 = vmax.f32 %v927_v36, 0.0 }
 0x291   : > { %v1377_v20 = vpop.eup %1376  ;;  %v863_v24 = vpop.xlane.xlu0 %862 }
 0x292   : > { %v1005_v25 = vmul.f32 %v1377_v20, %v957_v39  ;;  %v942_v26 = vmax.f32 %v926_v19, 0.0  ;;  %v929_v48 = vsub.f32 %v897_v43, %v913_v8  ;;  %v896_v14 = vmul.f32 0.0078125, %v863_v24 }
 0x293   : > { %v1379_v10 = vpop.eup %1378  ;;  %v975_v52 = vadd.f32 1e-05, %v943_v23 }
 0x294   : > { %v1028_v27 = vmul.f32 %v1884_v3, %v1005_v25  ;;  %v1004_v30 = vmul.f32 %v1379_v10, %v956_v21  ;;  %v974_v32 = vadd.f32 1e-05, %v942_v26  ;;  %v945_v45 = vmax.f32 %v929_v48, 0.0 }
 0x295   : > { %v1381_v50 = vpop.eup %1380  ;;  %1384 = vrsqrt.f32 %v975_v52  ;;  %v928_v53 = vsub.f32 %v896_v14, %v912_v41 }
 0x296   : > { %v1051_v34 = vadd.f32 %v1895_v13, %v1028_v27  ;;  %v1027_v33 = vmul.f32 %v1884_v3, %v1004_v30  ;;  %v1003_v35 = vmul.f32 %v1381_v50, %v955_v15  ;;  %1386 = vrsqrt.f32 %v974_v32 }
 0x297   : > { %v977_v18 = vadd.f32 1e-05, %v945_v45  ;;  %v944_v59 = vmax.f32 %v928_v53, 0.0 }
 0x298   : > { %v1383_v28 = vpop.eup %1382  ;;  %1067 = vst [vmem:[%s1904_s20 + $0x58] sm:$0xff] %v1051_v34  ;;  %v1050_v40 = vadd.f32 %v1895_v13, %v1027_v33  ;;  %v1026_v37 = vmul.f32 %v1884_v3, %v1003_v35 }
 0x299   : > { %v1002_v38 = vmul.f32 %v1383_v28, %v954_v47  ;;  %1388 = vrsqrt.f32 %v977_v18  ;;  %v976_v42 = vadd.f32 1e-05, %v944_v59 }
 0x29a   : > { %1066 = vst [vmem:[%s1904_s20 + $0x50] sm:$0xff] %v1050_v40  ;;  %v1049_v44 = vadd.f32 %v1895_v13, %v1026_v37 }
 0x29b   : > { %v1025_v46 = vmul.f32 %v1884_v3, %v1002_v38  ;;  %1390 = vrsqrt.f32 %v976_v42 }
 0x29c   : > { %1065 = vst [vmem:[%s1904_s20 + $0x48] sm:$0xff] %v1049_v44 }
 0x29d   : > { %v1048_v29 = vadd.f32 %v1895_v13, %v1025_v46 }
 0x29f   : > { %1064 = vst [vmem:[%s1904_s20 + $0x40] sm:$0xff] %v1048_v29 }
 0x2a2   : > { %v1385_v51 = vpop.eup %1384 }
 0x2a3   : > { %v1387_v57 = vpop.eup %1386  ;;  %v1007_v54 = vmul.f32 %v1385_v51, %v959_v12 }
 0x2a4   : > { %v1006_v55 = vmul.f32 %v1387_v57, %v958_v31 }
 0x2a5   : > { %v1030_v7 = vmul.f32 %v1884_v3, %v1007_v54 }
 0x2a6   : > { %v1389_v62 = vpop.eup %1388  ;;  %v1029_v49 = vmul.f32 %v1884_v3, %v1006_v55 }
 0x2a7   : > { %v1053_v2 = vadd.f32 %v1895_v13, %v1030_v7  ;;  %v1009_v56 = vmul.f32 %v1389_v62, %v961_v22 }
 0x2a8   : > { %v1391_v1 = vpop.eup %1390  ;;  %v1052_v17 = vadd.f32 %v1895_v13, %v1029_v49 }
 0x2a9   : > { %1069 = vst [vmem:[%s1904_s20 + $0x68] sm:$0xff] %v1053_v2  ;;  %v1032_v58 = vmul.f32 %v1884_v3, %v1009_v56  ;;  %v1008_v5 = vmul.f32 %v1391_v1, %v960_v63 }
 0x2aa   : > { %1068 = vst [vmem:[%s1904_s20 + $0x60] sm:$0xff] %v1052_v17 }
 0x2ab   : > { %v1055_v9 = vadd.f32 %v1895_v13, %v1032_v58  ;;  %v1031_v61 = vmul.f32 %v1884_v3, %v1008_v5 }
 0x2ad   : > { %1071 = vst [vmem:[%s1904_s20 + $0x78] sm:$0xff] %v1055_v9  ;;  %v1054_v60 = vadd.f32 %v1895_v13, %v1031_v61 }
 0x2af   : > { %1070 = vst [vmem:[%s1904_s20 + $0x70] sm:$0xff] %v1054_v60 }
 0x2b0   : > { %1405 = shalt.err (!%p1402_p3)
}
 0x2b1   : > { %s1406_s14 = scalar_lea.hbm %s2011_s8, 2048  ;;  %s1410_s19 = scalar_lea.hbm %s2067_s7, 4096 }
 0x2b2   : > { %p1407_p4 = scmp.ne.s32.totalorder %s2011_s8, %s1406_s14  ;;  %p1411_p9 = scmp.lt.s32.totalorder %s2011_s8, %s2067_s7 }
 0x2b3   : > { %p1412_p10 = scmp.lt.s32.totalorder %s1410_s19, %s1406_s14 }
 0x2b4   : > { %p1408_p7 = pnand %p1407_p4, %p1535_p5 }
 0x2b5   : > { %p1413_p11 = por %p1412_p10, %p1411_p9 }
 0x2b6   : > { %p1409_p8 = pneg %p1408_p7 }
 0x2b8   : > { %p1414_p12 = pnand %p1413_p11, %p1409_p8 }
 0x2ba   : > { %1417 = shalt.err (!%p1414_p12)
}
 0x2bb   : > { %s1455_s23 = smov 128   ;;  %s1456_s29 = smov 8  }
 0x2bc   : > { %1277 = dma.vmem_to_hbm [thread:$0]  (%p1535_p5), %s2013_s22, 2048, %s2011_s8, %s2020_s28, %s1455_s23, %s1455_s23, %s1456_s29  }
 0x2bd PF: > { %p1283_p13 = scmp.ge.s32.totalorder %s1452_s27, 2  ;;  %s1101_s9 = sand.u32 1, %s1440_s24  }
 0x2be   : > { %s1102_s13 = scalar_lea.sflag [#allocation3], %s1101_s9 }
 0x2bf   : > { %p1280_p0 = pnand %p1283_p13, %p1539_p6 }
 0x2c1   : > { %p1281_p1 = pneg %p1280_p0 }
 0x2c3   : > { %1435 = dma.done.wait (%p1281_p1), %s1102_s13, 2048  }
 0x2c4   : > { %1437 = vsyncadd (%p1281_p1), %s1102_s13, 4294965248  ;;  %p17_p2 = scmp.ge.s32.totalorder %s1522_s30, 4   ;;  %s2070_s24 = smov %s1444_s25 }
 0x2c5   : > { %s2071_s25 = smov %s1448_s26  ;;  %s2072_s26 = smov %s1533_s10 }
 0x2c6   : > { %s2073_s27 = smov %s1522_s30  ;;  %19 = sbr.rel (!%p17_p2) target bundleno = 3 (0x3), region = 83 }
 0x2cb   :  { %1107 = vsyncpa [#allocation3], 1 }
 0x2cc   :  { %1109 = vsyncpa [#allocation3 + $0x1], 1 }

</bundles_post_ra>
